<compile_context>
chip_gen: v7x
topology: tpu7x:2x2x1
jax: 0.10.0
libtpu: 0.0.40
codegen_flags: <defaults>
</compile_context>

<pallas_src>
import math

import jax
import jax.numpy as jnp
from jax.experimental import pallas as pl
from jax.experimental.pallas import tpu as pltpu

# Module hyper-parameters (normalized_shape=(2, 32, 16), num_heads=2, epsilon=1e-06)
L, N, E = 2, 32, 16          # seq-len, batch, embed-dim
NUM_HEADS = 2
HEAD_DIM = E // NUM_HEADS
EPS = 1e-6                   # module is constructed with epsilon=1e-06

# Packed-parameter buffer layout: shape (P_ROWS, P_COLS) float32
#   rows 0:64   cols  0:16  -> LayerNorm gamma  (reshaped to (L*N, E))
#   rows 0:64   cols 16:32  -> LayerNorm beta
#   rows 0:16   cols 32:48  -> head mask * 1/sqrt(HEAD_DIM)   (E, E) block-diagonal
#   rows 64:80  cols  0:48  -> in_proj_weight.T  (E, 3E)  [q | k | v]
#   rows 64:80  cols 48:64  -> out_proj_weight.T (E, E)
#   row  80     cols  0:48  -> in_proj_bias
#   row  80     cols 48:64  -> out_proj_bias
LN_ROWS = L * N              # 64
W_ROW0 = LN_ROWS             # 64
B_ROW = W_ROW0 + E           # 80
P_ROWS = B_ROW + 1           # 81
P_COLS = 4 * E               # 64


def mha_block_kernel(x_ref, p_ref, o_ref):
    x = x_ref[...].astype(jnp.float32)              # (L*N, E) = (64, 16)
    p = p_ref[...]                                  # (P_ROWS, P_COLS) f32

    gamma = p[0:LN_ROWS, 0:E]
    beta = p[0:LN_ROWS, E:2 * E]
    hmask = p[0:E, 2 * E:3 * E].astype(jnp.bfloat16)                 # (E, E) scaled head mask
    w_qkv = p[W_ROW0:W_ROW0 + E, 0:3 * E].astype(jnp.bfloat16)       # (E, 3E)
    w_out = p[W_ROW0:W_ROW0 + E, 3 * E:4 * E].astype(jnp.bfloat16)   # (E, E)
    b_qkv = p[B_ROW:B_ROW + 1, 0:3 * E]                              # (1, 3E) f32
    b_out = p[B_ROW:B_ROW + 1, 3 * E:4 * E]                          # (1, E)  f32

    # ---- LayerNorm over the whole tensor, single-pass stats ----
    mu = jnp.mean(x)
    var = jnp.mean(x * x) - mu * mu
    y = (x - mu) * jax.lax.rsqrt(var + EPS) * gamma + beta           # (L*N, E)

    # ---- fused Q/K/V in-projection: one MXU call for all L positions ----
    qkv = jnp.dot(y.astype(jnp.bfloat16), w_qkv,
                  preferred_element_type=jnp.float32) + b_qkv        # (L*N, 3E)

    q0 = qkv[0:N, 0:E]
    q1 = qkv[N:2 * N, 0:E]
    k0 = qkv[0:N, E:2 * E]
    k1 = qkv[N:2 * N, E:2 * E]
    v0 = qkv[0:N, 2 * E:3 * E]
    v1 = qkv[N:2 * N, 2 * E:3 * E]

    # ---- all 4 (query i, key j) score blocks in one MXU call ----
    # prods @ hmask sums each head's 8 lanes and broadcasts the (scaled) score back onto
    # that head's lanes, so everything downstream is full-width elementwise.
    prods = jnp.concatenate([q0 * k0, q0 * k1, q1 * k0, q1 * k1], axis=0)   # (4N, E) = (128,16)
    scores = jnp.dot(prods.astype(jnp.bfloat16), hmask,
                     preferred_element_type=jnp.float32)                     # (4N, E)

    s00 = scores[0:N]
    s01 = scores[N:2 * N]
    s10 = scores[2 * N:3 * N]
    s11 = scores[3 * N:4 * N]

    # ---- softmax over the L=2 key positions (per head, already lane-broadcast) ----
    m0 = jnp.maximum(s00, s01)
    m1 = jnp.maximum(s10, s11)
    e00 = jnp.exp(s00 - m0)
    e01 = jnp.exp(s01 - m0)
    e10 = jnp.exp(s10 - m1)
    e11 = jnp.exp(s11 - m1)
    inv0 = pl.reciprocal(e00 + e01, approx=True)                     # EUP slot (free-ish)
    inv1 = pl.reciprocal(e10 + e11, approx=True)
    # TODO(synk): attention dropout (p=0.5) is stochastic; identity in eval mode.
    attn0 = (e00 * v0 + e01 * v1) * inv0                             # (N, E)
    attn1 = (e10 * v0 + e11 * v1) * inv1                             # (N, E)
    attn = jnp.concatenate([attn0, attn1], axis=0)                   # (L*N, E)

    # ---- fused out-projection: one MXU call for all L positions ----
    out = jnp.dot(attn.astype(jnp.bfloat16), w_out,
                  preferred_element_type=jnp.float32) + b_out
    # TODO(synk): outer nn.Dropout(0.3) is stochastic; identity in eval mode.
    o_ref[...] = (out + x).astype(o_ref.dtype)                       # single full-tile store


def prepare_params(params):
    """One-time packing of all module parameters into a single (81, 64) f32 buffer."""
    gamma = params['ln_weight'].reshape(LN_ROWS, E).astype(jnp.float32)
    beta = params['ln_bias'].reshape(LN_ROWS, E).astype(jnp.float32)

    ids = jnp.arange(E, dtype=jnp.int32) // HEAD_DIM
    hmask = (ids[:, None] == ids[None, :]).astype(jnp.float32) / math.sqrt(HEAD_DIM)  # (E, E)

    top = jnp.zeros((LN_ROWS, P_COLS), jnp.float32)
    top = top.at[:, 0:E].set(gamma)
    top = top.at[:, E:2 * E].set(beta)
    top = top.at[0:E, 2 * E:3 * E].set(hmask)                                   # (64, 64)

    w_row = jnp.concatenate(
        [params['in_proj_weight'].T, params['out_proj_weight'].T], axis=1)      # (16, 64)
    b_row = jnp.concatenate(
        [params['in_proj_bias'], params['out_proj_bias']])[None, :]             # (1, 64)
    return jnp.concatenate(
        [top, w_row.astype(jnp.float32), b_row.astype(jnp.float32)], axis=0)    # (81, 64)


def _mha_block_flat(x_flat, ppack):
    vmem = pl.BlockSpec(memory_space=pltpu.MemorySpace.VMEM)
    return pl.pallas_call(
        mha_block_kernel,
        out_shape=jax.ShapeDtypeStruct((L * N, E), jnp.float32),
        in_specs=[vmem, vmem],
        out_specs=vmem,
    )(x_flat, ppack)


@jax.jit
def mha_block(x, ppack):
    """x: (L, N, E) seq-first float32 (module input); ppack from prepare_params()."""
    out = _mha_block_flat(x.reshape(L * N, E), ppack)
    return out.reshape(L, N, E)


def reference(x, params):
    """Pure-JAX reference of MhaBlock.forward (eval mode) in seq-first (L, N, E)."""
    mu = jnp.mean(x)
    var = jnp.mean(jnp.square(x - mu))
    y = (x - mu) / jnp.sqrt(var + EPS) * params['ln_weight'] + params['ln_bias']

    w_in, b_in = params['in_proj_weight'], params['in_proj_bias']
    q = y @ w_in[:E].T + b_in[:E]
    k = y @ w_in[E:2 * E].T + b_in[E:2 * E]
    v = y @ w_in[2 * E:].T + b_in[2 * E:]

    def split_heads(t):                                              # (L,N,E) -> (N,H,L,Dh)
        return t.reshape(L, N, NUM_HEADS, HEAD_DIM).transpose(1, 2, 0, 3)

    qh, kh, vh = split_heads(q), split_heads(k), split_heads(v)
    scores = jnp.einsum('nhid,nhjd->nhij', qh, kh) / math.sqrt(HEAD_DIM)
    p = jax.nn.softmax(scores, axis=-1)
    o = jnp.einsum('nhij,nhjd->nhid', p, vh)
    o = o.transpose(2, 0, 1, 3).reshape(L, N, E)
    o = o @ params['out_proj_weight'].T + params['out_proj_bias']
    return o + x


if __name__ == "__main__":
    key = jax.random.PRNGKey(0)
    keys = jax.random.split(key, 7)
    params = {
        'ln_weight': 1.0 + 0.1 * jax.random.normal(keys[0], (L, N, E), jnp.float32),
        'ln_bias': 0.1 * jax.random.normal(keys[1], (L, N, E), jnp.float32),
        'in_proj_weight': 0.2 * jax.random.normal(keys[2], (3 * E, E), jnp.float32),
        'in_proj_bias': 0.1 * jax.random.normal(keys[3], (3 * E,), jnp.float32),
        'out_proj_weight': 0.2 * jax.random.normal(keys[4], (E, E), jnp.float32),
        'out_proj_bias': 0.1 * jax.random.normal(keys[5], (E,), jnp.float32),
    }
    x = jax.random.normal(keys[6], (L, N, E), jnp.float32)          # module input (2, 32, 16)

    ppack = jax.block_until_ready(prepare_params(params))            # one-time param packing

    out = jax.block_until_ready(mha_block(x, ppack))
    ref = jax.block_until_ready(reference(x, params))

    assert out.shape == (L, N, E), out.shape
    max_err = float(jnp.max(jnp.abs(out - ref)))
    assert max_err < 5e-2, f"max abs err too large: {max_err}"
    print("KERNEL_OK")
</pallas_src>

<mosaic_0001>
module attributes {stable_mosaic.version = 11 : i64} {
  func.func @mha_block_kernel(%arg0: memref<64x16xf32, #tpu.memory_space<vmem>>, %arg1: memref<81x64xf32, #tpu.memory_space<vmem>>, %arg2: memref<64x16xf32, #tpu.memory_space<vmem>>) attributes {dimension_semantics = [], scalar_prefetch = 0 : i64, scratch_operands = 0 : i64, tpu.core_type = #tpu.core_type<tc>} {
    %c0 = arith.constant 0 : index
    %c0_0 = arith.constant 0 : index
    %0 = vector.load %arg0[%c0, %c0_0] : memref<64x16xf32, #tpu.memory_space<vmem>>, vector<64x16xf32>
    %c0_1 = arith.constant 0 : index
    %c0_2 = arith.constant 0 : index
    %1 = vector.load %arg1[%c0_1, %c0_2] : memref<81x64xf32, #tpu.memory_space<vmem>>, vector<81x64xf32>
    %2 = vector.extract_strided_slice %1 {offsets = [0, 0], sizes = [64, 16], strides = [1, 1]} : vector<81x64xf32> to vector<64x16xf32>
    %3 = vector.extract_strided_slice %1 {offsets = [0, 16], sizes = [64, 16], strides = [1, 1]} : vector<81x64xf32> to vector<64x16xf32>
    %4 = vector.extract_strided_slice %1 {offsets = [0, 32], sizes = [16, 16], strides = [1, 1]} : vector<81x64xf32> to vector<16x16xf32>
    %5 = arith.truncf %4 : vector<16x16xf32> to vector<16x16xbf16>
    %6 = vector.extract_strided_slice %1 {offsets = [64, 0], sizes = [16, 48], strides = [1, 1]} : vector<81x64xf32> to vector<16x48xf32>
    %7 = arith.truncf %6 : vector<16x48xf32> to vector<16x48xbf16>
    %8 = vector.extract_strided_slice %1 {offsets = [64, 48], sizes = [16, 16], strides = [1, 1]} : vector<81x64xf32> to vector<16x16xf32>
    %9 = arith.truncf %8 : vector<16x16xf32> to vector<16x16xbf16>
    %10 = vector.extract_strided_slice %1 {offsets = [80, 0], sizes = [1, 48], strides = [1, 1]} : vector<81x64xf32> to vector<1x48xf32>
    %11 = vector.extract_strided_slice %1 {offsets = [80, 48], sizes = [1, 16], strides = [1, 1]} : vector<81x64xf32> to vector<1x16xf32>
    %12 = vector.shape_cast %0 : vector<64x16xf32> to vector<1x64x16xf32>
    %cst = arith.constant dense<0.000000e+00> : vector<1xf32>
    %13 = vector.multi_reduction <add>, %12, %cst [1, 2] : vector<1x64x16xf32> to vector<1xf32>
    %14 = vector.shape_cast %13 : vector<1xf32> to vector<1x1x1xf32>
    %15 = vector.extract %14[0, 0, 0] : f32 from vector<1x1x1xf32>
    %cst_3 = arith.constant 1.024000e+03 : f32
    %16 = arith.divf %15, %cst_3 : f32
    %17 = arith.mulf %0, %0 : vector<64x16xf32>
    %18 = vector.shape_cast %17 : vector<64x16xf32> to vector<1x64x16xf32>
    %cst_4 = arith.constant dense<0.000000e+00> : vector<1xf32>
    %19 = vector.multi_reduction <add>, %18, %cst_4 [1, 2] : vector<1x64x16xf32> to vector<1xf32>
    %20 = vector.shape_cast %19 : vector<1xf32> to vector<1x1x1xf32>
    %21 = vector.extract %20[0, 0, 0] : f32 from vector<1x1x1xf32>
    %cst_5 = arith.constant 1.024000e+03 : f32
    %22 = arith.divf %21, %cst_5 : f32
    %23 = arith.mulf %16, %16 : f32
    %24 = arith.subf %22, %23 : f32
    %25 = vector.broadcast %16 : f32 to vector<64x16xf32>
    %26 = arith.subf %0, %25 : vector<64x16xf32>
    %cst_6 = arith.constant 9.99999997E-7 : f32
    %27 = arith.addf %24, %cst_6 : f32
    %28 = math.rsqrt %27 : f32
    %29 = vector.broadcast %28 : f32 to vector<64x16xf32>
    %30 = arith.mulf %26, %29 : vector<64x16xf32>
    %31 = arith.mulf %30, %2 : vector<64x16xf32>
    %32 = arith.addf %31, %3 : vector<64x16xf32>
    %33 = arith.truncf %32 : vector<64x16xf32> to vector<64x16xbf16>
    %cst_7 = arith.constant dense<0.000000e+00> : vector<64x48xf32>
    %34 = tpu.matmul %33, %7, %cst_7 {dimension_numbers = #tpu.dot_dimension_numbers<[1], [0], [0], [1], [0, 0, 1, 1], [], []>} : vector<64x16xbf16>, vector<16x48xbf16>, vector<64x48xf32> -> vector<64x48xf32>
    %35 = vector.broadcast %10 : vector<1x48xf32> to vector<64x48xf32>
    %36 = arith.addf %34, %35 : vector<64x48xf32>
    %37 = vector.extract_strided_slice %36 {offsets = [0, 0], sizes = [32, 16], strides = [1, 1]} : vector<64x48xf32> to vector<32x16xf32>
    %38 = vector.extract_strided_slice %36 {offsets = [32, 0], sizes = [32, 16], strides = [1, 1]} : vector<64x48xf32> to vector<32x16xf32>
    %39 = vector.extract_strided_slice %36 {offsets = [0, 16], sizes = [32, 16], strides = [1, 1]} : vector<64x48xf32> to vector<32x16xf32>
    %40 = vector.extract_strided_slice %36 {offsets = [32, 16], sizes = [32, 16], strides = [1, 1]} : vector<64x48xf32> to vector<32x16xf32>
    %41 = vector.extract_strided_slice %36 {offsets = [0, 32], sizes = [32, 16], strides = [1, 1]} : vector<64x48xf32> to vector<32x16xf32>
    %42 = vector.extract_strided_slice %36 {offsets = [32, 32], sizes = [32, 16], strides = [1, 1]} : vector<64x48xf32> to vector<32x16xf32>
    %43 = arith.mulf %37, %39 : vector<32x16xf32>
    %44 = arith.mulf %37, %40 : vector<32x16xf32>
    %45 = arith.mulf %38, %39 : vector<32x16xf32>
    %46 = arith.mulf %38, %40 : vector<32x16xf32>
    %47 = tpu.concatenate %43, %44, %45, %46 in 0 : vector<32x16xf32>, vector<32x16xf32>, vector<32x16xf32>, vector<32x16xf32> -> vector<128x16xf32>
    %48 = arith.truncf %47 : vector<128x16xf32> to vector<128x16xbf16>
    %cst_8 = arith.constant dense<0.000000e+00> : vector<128x16xf32>
    %49 = tpu.matmul %48, %5, %cst_8 {dimension_numbers = #tpu.dot_dimension_numbers<[1], [0], [0], [1], [0, 0, 1, 1], [], []>} : vector<128x16xbf16>, vector<16x16xbf16>, vector<128x16xf32> -> vector<128x16xf32>
    %50 = vector.extract_strided_slice %49 {offsets = [0, 0], sizes = [32, 16], strides = [1, 1]} : vector<128x16xf32> to vector<32x16xf32>
    %51 = vector.extract_strided_slice %49 {offsets = [32, 0], sizes = [32, 16], strides = [1, 1]} : vector<128x16xf32> to vector<32x16xf32>
    %52 = vector.extract_strided_slice %49 {offsets = [64, 0], sizes = [32, 16], strides = [1, 1]} : vector<128x16xf32> to vector<32x16xf32>
    %53 = vector.extract_strided_slice %49 {offsets = [96, 0], sizes = [32, 16], strides = [1, 1]} : vector<128x16xf32> to vector<32x16xf32>
    %54 = arith.maximumf %50, %51 : vector<32x16xf32>
    %55 = arith.maximumf %52, %53 : vector<32x16xf32>
    %56 = arith.subf %50, %54 : vector<32x16xf32>
    %57 = math.exp %56 : vector<32x16xf32>
    %58 = arith.subf %51, %54 : vector<32x16xf32>
    %59 = math.exp %58 : vector<32x16xf32>
    %60 = arith.subf %52, %55 : vector<32x16xf32>
    %61 = math.exp %60 : vector<32x16xf32>
    %62 = arith.subf %53, %55 : vector<32x16xf32>
    %63 = math.exp %62 : vector<32x16xf32>
    %64 = arith.addf %57, %59 : vector<32x16xf32>
    %65 = tpu.reciprocal %64 {approx = true} : vector<32x16xf32> -> vector<32x16xf32>
    %66 = arith.addf %61, %63 : vector<32x16xf32>
    %67 = tpu.reciprocal %66 {approx = true} : vector<32x16xf32> -> vector<32x16xf32>
    %68 = arith.mulf %57, %41 : vector<32x16xf32>
    %69 = arith.mulf %59, %42 : vector<32x16xf32>
    %70 = arith.addf %68, %69 : vector<32x16xf32>
    %71 = arith.mulf %70, %65 : vector<32x16xf32>
    %72 = arith.mulf %61, %41 : vector<32x16xf32>
    %73 = arith.mulf %63, %42 : vector<32x16xf32>
    %74 = arith.addf %72, %73 : vector<32x16xf32>
    %75 = arith.mulf %74, %67 : vector<32x16xf32>
    %76 = tpu.concatenate %71, %75 in 0 : vector<32x16xf32>, vector<32x16xf32> -> vector<64x16xf32>
    %77 = arith.truncf %76 : vector<64x16xf32> to vector<64x16xbf16>
    %cst_9 = arith.constant dense<0.000000e+00> : vector<64x16xf32>
    %78 = tpu.matmul %77, %9, %cst_9 {dimension_numbers = #tpu.dot_dimension_numbers<[1], [0], [0], [1], [0, 0, 1, 1], [], []>} : vector<64x16xbf16>, vector<16x16xbf16>, vector<64x16xf32> -> vector<64x16xf32>
    %79 = vector.broadcast %11 : vector<1x16xf32> to vector<64x16xf32>
    %80 = arith.addf %78, %79 : vector<64x16xf32>
    %81 = arith.addf %80, %0 : vector<64x16xf32>
    %c0_10 = arith.constant 0 : index
    %c0_11 = arith.constant 0 : index
    %82 = vector.load %arg2[%c0_10, %c0_11] : memref<64x16xf32, #tpu.memory_space<vmem>>, vector<64x16xf32>
    tpu.vector_store %arg2[%c0_10, %c0_11], %81 {strides = array<i32>} : memref<64x16xf32, #tpu.memory_space<vmem>>, vector<64x16xf32>,
    return
  }
}

</mosaic_0001>

<bundles_post_ra>
// kernel: mha_block.1
= control target key start
LH: loop header
LB: loop body
LE: loop exit
PB: predicated region body
PF: predicated region fallthrough
CT: control target
= control target key end

     0   :  { %vm33_vm0 = vcmask 130048   ;;  %s804_s26 = smov 112   ;;  %s806_s27 = smov 80   ;;  %s1082_s0 = inlined_call_operand.vmem [shape: f32[64,16], index: 0, kind: input, shape index: {}]   ;;  %s1083_s1 = inlined_call_operand.vmem [shape: f32[81,64], index: 1, kind: input, shape index: {}]   ;;  %s1084_s2 = inlined_call_operand.vmem [shape: f32[64,16], index: 2, kind: output, shape index: {}]  }
   0x1   :  { %v825_v0 = vld [vmem:[%s1082_s0] sm:$0xff]  ;;  %v830_v1 = vld [vmem:[%s1082_s0 + $0x8] sm:$0xff]  ;;  %v835_v2 = vld [vmem:[%s1082_s0 + $0x10] sm:$0xff] }
   0x2   :  { %v840_v3 = vld [vmem:[%s1082_s0 + $0x18] sm:$0xff]  ;;  %v34_v4 = vsel %vm33_vm0, %v825_v0, 0.0  ;;  %v35_v5 = vsel %vm33_vm0, %v830_v1, 0.0  ;;  %v37_v6 = vsel %vm33_vm0, %v835_v2, 0.0  ;;  %v61_v7 = vmul.f32 %v825_v0, %v825_v0  ;;  %v853_v8 = vld [vmem:[%s1082_s0 + $0x20] sm:$0xff]  ;;  %v864_v13 = vld [vmem:[%s1082_s0 + $0x28] sm:$0xff] }
   0x3   :  { %v36_v9 = vadd.f32 %v35_v5, %v34_v4  ;;  %v39_v10 = vsel %vm33_vm0, %v840_v3, 0.0  ;;  %v62_v11 = vmul.f32 %v830_v1, %v830_v1  ;;  %v63_v12 = vmul.f32 %v835_v2, %v835_v2  ;;  %v877_v20 = vld [vmem:[%s1082_s0 + $0x30] sm:$0xff]  ;;  %v888_v27 = vld [vmem:[%s1082_s0 + $0x38] sm:$0xff]  ;;  %v905_v46 = vld [vmem:[%s1083_s1] sm:$0xff] }
   0x4   :  { %v64_v15 = vmul.f32 %v840_v3, %v840_v3  ;;  %v41_v16 = vsel %vm33_vm0, %v853_v8, 0.0  ;;  %v65_v17 = vmul.f32 %v853_v8, %v853_v8  ;;  %v69_v18 = vsel %vm33_vm0, %v61_v7, 0.0  ;;  %136 = vrot.lane.b32.xlu1 %v905_v46, %s804_s26  ;;  %v912_v47 = vld [vmem:[%s1083_s1 + $0x8] sm:$0xff]  ;;  %v919_v48 = vld [vmem:[%s1083_s1 + $0x18] sm:$0xff]  ;;  %v926_v49 = vld [vmem:[%s1083_s1 + $0x20] sm:$0xff] }
   0x5   :  { %v38_v14 = vadd.f32 %v37_v6, %v36_v9  ;;  %v70_v19 = vsel %vm33_vm0, %v62_v11, 0.0  ;;  %v72_v23 = vsel %vm33_vm0, %v63_v12, 0.0  ;;  %v43_v24 = vsel %vm33_vm0, %v864_v13, 0.0  ;;  %v933_v50 = vld [vmem:[%s1083_s1 + $0x28] sm:$0xff]  ;;  %v22_v51 = vld [vmem:[%s1083_s1 + $0x10] sm:$0xff]  ;;  %v951_v53 = vld [vmem:[%s1083_s1 + $0x38] sm:$0xff] }
   0x6   :  { %v71_v22 = vadd.f32 %v70_v19, %v69_v18  ;;  %v66_v25 = vmul.f32 %v864_v13, %v864_v13  ;;  %v74_v26 = vsel %vm33_vm0, %v64_v15, 0.0  ;;  %v45_v30 = vsel %vm33_vm0, %v877_v20, 0.0  ;;  %v943_v52 = vld [vmem:[%s1083_s1 + $0x30] sm:$0xff]  ;;  %v28_v4 = vld [vmem:[%s1083_s1 + $0x40] sm:$0xff]  ;;  %v29_v5 = vld [vmem:[%s1083_s1 + $0x48] sm:$0xff] }
   0x7   :  { %v40_v21 = vadd.f32 %v39_v10, %v38_v14  ;;  %v67_v31 = vmul.f32 %v877_v20, %v877_v20  ;;  %v76_v32 = vsel %vm33_vm0, %v65_v17, 0.0  ;;  %v47_v35 = vsel %vm33_vm0, %v888_v27, 0.0 }
   0x8   :  { %v73_v29 = vadd.f32 %v72_v23, %v71_v22  ;;  %v68_v36 = vmul.f32 %v888_v27, %v888_v27  ;;  %v78_v37 = vsel %vm33_vm0, %v66_v25, 0.0  ;;  %138 = vrot.lane.b32.xlu1 %v912_v47, %s804_s26  ;;  %v961_v9 = vpack.c.bf16 %v29_v5, %v28_v4 }
   0x9   :  { %v42_v28 = vadd.f32 %v41_v16, %v40_v21  ;;  %v80_v40 = vsel %vm33_vm0, %v67_v31, 0.0 }
   0xa   :  { %v75_v34 = vadd.f32 %v74_v26, %v73_v29  ;;  %v82_v43 = vsel %vm33_vm0, %v68_v36, 0.0  ;;  %707 = vmatprep.subr.bf16.mxu0 %v961_v9 }
   0xb   :  { %v44_v33 = vadd.f32 %v43_v24, %v42_v28  ;;  %708 = vmatpush3.bf16.msra.mxu0 %v961_v9 }
   0xc   :  { %v77_v39 = vadd.f32 %v76_v32, %v75_v34  ;;  %142 = vrot.lane.b32.xlu1 %v919_v48, %s804_s26 }
   0xd   :  { %v46_v38 = vadd.f32 %v45_v30, %v44_v33 }
   0xe   :  { %v79_v42 = vadd.f32 %v78_v37, %v77_v39 }
   0xf   :  { %v48_v41 = vadd.f32 %v47_v35, %v46_v38 }
  0x10   :  { %v81_v44 = vadd.f32 %v80_v40, %v79_v42  ;;  %144 = vrot.lane.b32.xlu1 %v926_v49, %s804_s26 }
  0x11   :  { %49 = vadd.xlane.f32.xlu0 %v48_v41 }
  0x12   :  { %v83_v45 = vadd.f32 %v82_v43, %v81_v44 }
  0x14   :  { %146 = vrot.lane.b32.xlu1 %v933_v50, %s804_s26 }
  0x15   :  { %84 = vadd.xlane.f32.xlu0 %v83_v45 }
  0x18   :  { %148 = vrot.lane.b32.xlu1 %v943_v52, %s804_s26 }
  0x1c   :  { %150 = vrot.lane.b32.xlu1 %v951_v53, %s804_s26 }
  0x2b   :  { %140 = vrot.lane.b32.xlu0 %v22_v51, %s804_s26 }
  0x76   :  { %v137_v15 = vpop.permute.xlu1 %136 }
  0x7a   :  { %v139_v16 = vpop.permute.xlu1 %138 }
  0x7e   :  { %v143_v17 = vpop.permute.xlu1 %142 }
  0x82   :  { %v145_v18 = vpop.permute.xlu1 %144 }
  0x86   :  { %v147_v21 = vpop.permute.xlu1 %146 }
  0x8a   :  { %v149_v41 = vpop.permute.xlu1 %148 }
  0x8e   :  { %v151_v4 = vpop.permute.xlu1 %150 }
  0x9e   :  { %v50_v54 = vpop.xlane.xlu0 %49 }
  0x9f   :  { %v51_v55 = vrot.slane %v50_v54, 4 }
  0xa1   :  { %v52_v56 = vadd.f32 %v51_v55, %v50_v54 }
  0xa2   :  { %v85_v57 = vpop.xlane.xlu0 %84 }
  0xa3   :  { %v53_v58 = vrot.slane %v52_v56, 2  ;;  %v86_v59 = vrot.slane %v85_v57, 4 }
  0xa5   :  { %v87_v60 = vadd.f32 %v86_v59, %v85_v57  ;;  %v54_v61 = vadd.f32 %v53_v58, %v52_v56 }
  0xa6   :  { %v141_v32 = vpop.permute.xlu0 %140 }
  0xa7   :  { %v88_v62 = vrot.slane %v87_v60, 2  ;;  %v55_v63 = vrot.slane %v54_v61, 1 }
  0xa9   :  { %v56_v6 = vadd.f32 %v55_v63, %v54_v61  ;;  %v89_v7 = vadd.f32 %v88_v62, %v87_v60 }
  0xab   :  { %745 = vpush %v56_v6  ;;  %v90_v10 = vrot.slane %v89_v7, 1 }
  0xad   :  { %v91_v11 = vadd.f32 %v90_v10, %v89_v7  ;;  %v671_v7 = vld [vmem:[%s1083_s1 + $0x50] ss:$0 sm:$0xff]  ;;  %s805_s1 = smov 96  }
  0xaf   :  { %747 = vpush %v91_v11 }
  0xdc   :  { %s746_s17 = spop %745 }
  0xdd   :  { %s60_s18 = smul.f32 0.0009765625, %s746_s17 }
  0xdf   :  { %s96_s19 = smul.f32 %s60_s18, %s60_s18  ;;  %v98_v19 = vstv %s60_s18 }
  0xe0   :  { %s748_s20 = spop %747  ;;  %v101_v22 = vsub.f32 %v835_v2, %v98_v19  ;;  %v102_v23 = vsub.f32 %v840_v3, %v98_v19  ;;  %v99_v24 = vsub.f32 %v825_v0, %v98_v19  ;;  %v100_v26 = vsub.f32 %v830_v1, %v98_v19 }
  0xe1   :  { %s95_s21 = smul.f32 0.0009765625, %s748_s20  ;;  %v103_v28 = vsub.f32 %v853_v8, %v98_v19  ;;  %v104_v29 = vsub.f32 %v864_v13, %v98_v19  ;;  %v105_v37 = vsub.f32 %v877_v20, %v98_v19  ;;  %v106_v38 = vsub.f32 %v888_v27, %v98_v19 }
  0xe3   :  { %s97_s22 = ssub.f32 %s95_s21, %s96_s19 }
  0xe5   :  { %s107_s23 = sadd.f32 1e-06, %s97_s22 }
  0xe7   :  { %v108_v12 = vstv %s107_s23 }
  0xe8   :  { %754 = vrsqrt.f32 %v108_v12 }
  0xf2   :  { %v755_v14 = vpop.eup %754 }
  0xf3   :  { %749 = vpush %v755_v14 }
 0x124   :  { %s750_s24 = spop %749 }
 0x125   :  { %v111_v25 = vstv %s750_s24 }
 0x126   :  { %v114_v30 = vmul.f32 %v111_v25, %v101_v22  ;;  %v115_v31 = vmul.f32 %v111_v25, %v102_v23  ;;  %v112_v33 = vmul.f32 %v111_v25, %v99_v24  ;;  %v113_v34 = vmul.f32 %v111_v25, %v100_v26 }
 0x127   :  { %v116_v35 = vmul.f32 %v111_v25, %v103_v28  ;;  %v117_v36 = vmul.f32 %v111_v25, %v104_v29  ;;  %v118_v54 = vmul.f32 %v111_v25, %v105_v37  ;;  %v119_v55 = vmul.f32 %v111_v25, %v106_v38 }
 0x128   :  { %v122_v39 = vmul.f32 %v114_v30, %v22_v51  ;;  %v123_v40 = vmul.f32 %v115_v31, %v919_v48  ;;  %v120_v42 = vmul.f32 %v112_v33, %v905_v46  ;;  %v121_v43 = vmul.f32 %v113_v34, %v912_v47 }
 0x129   :  { %v124_v44 = vmul.f32 %v116_v35, %v926_v49  ;;  %v125_v45 = vmul.f32 %v117_v36, %v933_v50  ;;  %v126_v48 = vmul.f32 %v118_v54, %v943_v52  ;;  %v127_v63 = vmul.f32 %v119_v55, %v951_v53 }
 0x12a   :  { %v163_v56 = vadd.f32 %v143_v17, %v123_v40  ;;  %v162_v57 = vadd.f32 %v141_v32, %v122_v39  ;;  %v160_v58 = vadd.f32 %v137_v15, %v120_v42  ;;  %v161_v59 = vadd.f32 %v139_v16, %v121_v43 }
 0x12b   :  { %v164_v60 = vadd.f32 %v145_v18, %v124_v44  ;;  %v165_v61 = vadd.f32 %v147_v21, %v125_v45  ;;  %v166_v50 = vadd.f32 %v149_v41, %v126_v48  ;;  %v167_v5 = vadd.f32 %v151_v4, %v127_v63 }
 0x12c   :  { %v169_v51 = vpack.c.bf16 %v163_v56, %v162_v57  ;;  %v168_v62 = vpack.c.bf16 %v161_v59, %v160_v58  ;;  %v31_v16 = vpack.c.bf16 %v912_v47, %v905_v46 }
 0x12d   :  { %v170_v49 = vpack.c.bf16 %v165_v61, %v164_v60  ;;  %v171_v6 = vpack.c.bf16 %v167_v5, %v166_v50 }
 0x12e   :  { %709 = vmatprep.mubr.msk.bf16.mxu0 %vm33_vm0, %v168_v62 }
 0x12f   :  { %710 = vmatmul.mubr.msk.bf16.vlgmr.msra.gmra.mrb[0].mxu0 %vm33_vm0, %v169_v51 }
 0x130   :  { %713 = vmatprep.mubr.msk.bf16.mxu0 %vm33_vm0, %v170_v49 }
 0x137   :  { %714 = vmatmul.mubr.msk.bf16.gmra.mrb[4].mxu0 %vm33_vm0, %v171_v6 }
 0x202   :  { %v711_v52 = vpop.f32.mrb[0].mxu0 }
 0x203   :  { %v231_v10 = vadd.f32 %v711_v52, %v671_v7  ;;  %v222_v53 = vpop.f32.mrb[1].mxu0 }
 0x204   :  { %v712_v11 = vpop.f32.mrb[2].mxu0  ;;  %v223_v15 = vadd.f32 %v671_v7, %v222_v53 }
 0x205   :  { %261 = vrot.lane.b32.xlu1 %v231_v10, %s804_s26  ;;  %v225_v12 = vpop.f32.mrb[3].mxu0  ;;  %v234_v17 = vadd.f32 %v712_v11, %v671_v7 }
 0x206   :  { %v226_v14 = vadd.f32 %v671_v7, %v225_v12 }
 0x208   :  { %259 = vrot.lane.b32.xlu0 %v226_v14, %s804_s26 }
 0x209   :  { %257 = vrot.lane.b32.xlu1 %v223_v15, %s804_s26 }
 0x20a   :  { %v715_v18 = vpop.f32.mrb[4].mxu0 }
 0x20b   :  { %v238_v19 = vpop.f32.mrb[5].mxu0  ;;  %v247_v25 = vadd.f32 %v715_v18, %v671_v7 }
 0x20c   :  { %v716_v21 = vpop.f32.mrb[6].mxu0  ;;  %263 = vrot.lane.b32.xlu0 %v234_v17, %s804_s26  ;;  %v239_v23 = vadd.f32 %v671_v7, %v238_v19 }
 0x20d   :  { %v241_v22 = vpop.f32.mrb[7].mxu0  ;;  %310 = vrot.lane.b32.xlu1 %v31_v16, %s805_s1  ;;  %v250_v26 = vadd.f32 %v716_v21, %v671_v7 }
 0x20e   :  { %v242_v24 = vadd.f32 %v671_v7, %v241_v22 }
 0x210   :  { %277 = vrot.lane.b32.xlu0 %v239_v23, %s804_s26 }
 0x211   :  { %279 = vrot.lane.b32.xlu1 %v242_v24, %s804_s26 }
 0x214   :  { %281 = vrot.lane.b32.xlu0 %v247_v25, %s804_s26 }
 0x215   :  { %283 = vrot.lane.b32.xlu1 %v250_v26, %s804_s26 }
 0x218   :  { %506 = vrot.lane.b32.xlu0 %v223_v15, %s805_s1 }
 0x219   :  { %508 = vrot.lane.b32.xlu1 %v226_v14, %s805_s1 }
 0x21c   :  { %522 = vrot.lane.b32.xlu0 %v239_v23, %s805_s1 }
 0x21d   :  { %512 = vrot.lane.b32.xlu1 %v234_v17, %s805_s1 }
 0x220   :  { %510 = vrot.lane.b32.xlu0 %v231_v10, %s805_s1 }
 0x221   :  { %524 = vrot.lane.b32.xlu1 %v242_v24, %s805_s1 }
 0x224   :  { %526 = vrot.lane.b32.xlu0 %v247_v25, %s805_s1 }
 0x225   :  { %528 = vrot.lane.b32.xlu1 %v250_v26, %s805_s1 }
 0x228   :  { %567 = vrot.lane.b32.xlu0 %v961_v9, %s806_s27 }
 0x229   :  { %571 = vrot.lane.b32.xlu1 %v671_v7, %s806_s27 }
 0x277   :  { %v262_v46 = vpop.permute.xlu1 %261 }
 0x278   :  { %v271_v33 = vmul.f32 %v262_v46, %v231_v10  ;;  %v295_v60 = vmul.f32 %v262_v46, %v247_v25 }
 0x27a   :  { %v260_v47 = vpop.permute.xlu0 %259 }
 0x27b   :  { %v270_v28 = vmul.f32 %v260_v47, %v226_v14  ;;  %v258_v29 = vpop.permute.xlu1 %257  ;;  %v294_v42 = vmul.f32 %v260_v47, %v242_v24 }
 0x27c   :  { %v269_v30 = vmul.f32 %v258_v29, %v223_v15  ;;  %v293_v43 = vmul.f32 %v258_v29, %v239_v23 }
 0x27e   :  { %v264_v31 = vpop.permute.xlu0 %263  ;;  %v301_v32 = vpack.c.bf16 %v270_v28, %v269_v30  ;;  %v305_v56 = vpack.c.bf16 %v294_v42, %v293_v43 }
 0x27f   :  { %v272_v34 = vmul.f32 %v264_v31, %v234_v17  ;;  %v311_v35 = vpop.permute.xlu1 %310  ;;  %v296_v57 = vmul.f32 %v264_v31, %v250_v26 }
 0x280   :  { %717 = vmatprep.subr.bf16.mxu1 %v311_v35  ;;  %719 = vmatprep.mubr.msk.bf16.mxu1 %vm33_vm0, %v301_v32 }
 0x281   :  { %v302_v36 = vpack.c.bf16 %v272_v34, %v271_v33  ;;  %718 = vmatpush3.bf16.msra.mxu1 %v311_v35  ;;  %v306_v61 = vpack.c.bf16 %v296_v57, %v295_v60 }
 0x282   :  { %v278_v37 = vpop.permute.xlu0 %277 }
 0x283   :  { %v289_v38 = vmul.f32 %v278_v37, %v223_v15  ;;  %v280_v39 = vpop.permute.xlu1 %279  ;;  %v297_v58 = vmul.f32 %v278_v37, %v239_v23 }
 0x284   :  { %v290_v9 = vmul.f32 %v280_v39, %v226_v14  ;;  %720 = vmatmul.mubr.msk.bf16.vlgmr.msra.gmra.mrb[0].mxu1 %vm33_vm0, %v302_v36  ;;  %v298_v59 = vmul.f32 %v280_v39, %v242_v24 }
 0x286   :  { %v303_v40 = vpack.c.bf16 %v290_v9, %v289_v38  ;;  %v282_v41 = vpop.permute.xlu0 %281  ;;  %v307_v51 = vpack.c.bf16 %v298_v59, %v297_v58 }
 0x287   :  { %v291_v44 = vmul.f32 %v282_v41, %v231_v10  ;;  %v284_v45 = vpop.permute.xlu1 %283  ;;  %v299_v62 = vmul.f32 %v282_v41, %v247_v25 }
 0x288   :  { %v292_v54 = vmul.f32 %v284_v45, %v234_v17  ;;  %723 = vmatprep.mubr.msk.bf16.mxu1 %vm33_vm0, %v303_v40  ;;  %v300_v48 = vmul.f32 %v284_v45, %v250_v26 }
 0x28a   :  { %v304_v55 = vpack.c.bf16 %v292_v54, %v291_v44  ;;  %v308_v63 = vpack.c.bf16 %v300_v48, %v299_v62  ;;  %v1006_v4 = vpop.permute.xlu0 %506 }
 0x28b   :  { %v1014_v22 = vpop.permute.xlu1 %508 }
 0x28c   :  { %724 = vmatmul.mubr.msk.bf16.gmra.mrb[4].mxu1 %vm33_vm0, %v304_v55 }
 0x28d   :  { %727 = vmatprep.mubr.msk.bf16.mxu1 %vm33_vm0, %v305_v56 }
 0x28e   :  { %v1008_v49 = vpop.permute.xlu0 %522 }
 0x28f   :  { %v1016_v38 = vpop.permute.xlu1 %512 }
 0x292   :  { %v1010_v50 = vpop.permute.xlu0 %510 }
 0x293   :  { %v1018_v41 = vpop.permute.xlu1 %524 }
 0x294   :  { %728 = vmatmul.mubr.msk.bf16.gmra.mrb[8].mxu1 %vm33_vm0, %v306_v61 }
 0x295   :  { %731 = vmatprep.mubr.msk.bf16.mxu1 %vm33_vm0, %v307_v51 }
 0x296   :  { %v1012_v5 = vpop.permute.xlu0 %526 }
 0x29a   :  { %v568_v6 = vpop.permute.xlu0 %567 }
 0x29b   :  { %735 = vmatprep.subr.bf16.mxu0 %v568_v6 }
 0x29c   :  { %732 = vmatmul.mubr.msk.bf16.gmra.mrb[12].mxu1 %vm33_vm0, %v308_v63  ;;  %736 = vmatpush3.bf16.msra.mxu0 %v568_v6 }
 0x357   :  { %v721_v7 = vpop.f32.mrb[0].mxu1 }
 0x358   :  { %v371_v52 = vpop.f32.mrb[1].mxu1 }
 0x359   :  { %v722_v10 = vpop.f32.mrb[2].mxu1 }
 0x35a   :  { %v374_v53 = vpop.f32.mrb[3].mxu1 }
 0x35f   :  { %v725_v11 = vpop.f32.mrb[4].mxu1 }
 0x360   :  { %v436_v12 = vmax.f32 %v721_v7, %v725_v11  ;;  %v387_v14 = vpop.f32.mrb[5].mxu1 }
 0x361   :  { %v434_v15 = vmax.f32 %v371_v52, %v387_v14  ;;  %v726_v16 = vpop.f32.mrb[6].mxu1 }
 0x362   :  { %v444_v17 = vsub.f32 %v721_v7, %v436_v12  ;;  %v456_v18 = vsub.f32 %v725_v11, %v436_v12  ;;  %v437_v19 = vmax.f32 %v722_v10, %v726_v16  ;;  %v390_v21 = vpop.f32.mrb[7].mxu1 }
 0x363   :  { %v442_v23 = vsub.f32 %v371_v52, %v434_v15  ;;  %v454_v24 = vsub.f32 %v387_v14, %v434_v15  ;;  %v435_v25 = vmax.f32 %v374_v53, %v390_v21  ;;  %v1022_v15 = vpop.permute.xlu1 %528 }
 0x364   :  { %v450_v26 = vmul.f32 1.442695, %v444_v17  ;;  %v462_v46 = vmul.f32 1.442695, %v456_v18  ;;  %v445_v47 = vsub.f32 %v722_v10, %v437_v19  ;;  %v457_v28 = vsub.f32 %v726_v16, %v437_v19 }
 0x365   :  { %v446_v29 = vmul.f32 1.442695, %v442_v23  ;;  %v458_v30 = vmul.f32 1.442695, %v454_v24  ;;  %v443_v31 = vsub.f32 %v374_v53, %v435_v25  ;;  %v455_v32 = vsub.f32 %v390_v21, %v435_v25 }
 0x366   :  { %756 = vpow2.f32 %v450_v26  ;;  %v452_v33 = vmul.f32 1.442695, %v445_v47  ;;  %v464_v34 = vmul.f32 1.442695, %v457_v28 }
 0x367   :  { %758 = vpow2.f32 %v462_v46  ;;  %v729_v35 = vpop.f32.mrb[8].mxu1  ;;  %v448_v36 = vmul.f32 1.442695, %v443_v31  ;;  %v460_v39 = vmul.f32 1.442695, %v455_v32 }
 0x368   :  { %760 = vpow2.f32 %v446_v29  ;;  %v403_v37 = vpop.f32.mrb[9].mxu1 }
 0x369   :  { %762 = vpow2.f32 %v458_v30  ;;  %v730_v9 = vpop.f32.mrb[10].mxu1 }
 0x36a   :  { %764 = vpow2.f32 %v452_v33  ;;  %v406_v40 = vpop.f32.mrb[11].mxu1 }
 0x36b   :  { %766 = vpow2.f32 %v464_v34 }
 0x36c   :  { %768 = vpow2.f32 %v448_v36 }
 0x36d   :  { %770 = vpow2.f32 %v460_v39 }
 0x36f   :  { %v733_v42 = vpop.f32.mrb[12].mxu1 }
 0x370   :  { %v757_v43 = vpop.eup %756  ;;  %v440_v44 = vmax.f32 %v729_v35, %v733_v42  ;;  %v419_v45 = vpop.f32.mrb[13].mxu1 }
 0x371   :  { %v759_v54 = vpop.eup %758  ;;  %v520_v55 = vmul.f32 %v757_v43, %v1010_v50  ;;  %v438_v56 = vmax.f32 %v403_v37, %v419_v45  ;;  %v734_v57 = vpop.f32.mrb[14].mxu1 }
 0x372   :  { %v761_v58 = vpop.eup %760  ;;  %v492_v59 = vadd.f32 %v759_v54, %v757_v43  ;;  %v536_v60 = vmul.f32 %v759_v54, %v1012_v5  ;;  %v468_v61 = vsub.f32 %v729_v35, %v440_v44  ;;  %v480_v51 = vsub.f32 %v733_v42, %v440_v44  ;;  %v422_v62 = vpop.f32.mrb[15].mxu1 }
 0x373   :  { %v763_v48 = vpop.eup %762  ;;  %v466_v63 = vsub.f32 %v403_v37, %v438_v56  ;;  %v478_v6 = vsub.f32 %v419_v45, %v438_v56  ;;  %v441_v7 = vmax.f32 %v730_v9, %v734_v57  ;;  %v439_v52 = vmax.f32 %v406_v40, %v422_v62 }
 0x374   :  { %v765_v10 = vpop.eup %764  ;;  %772 = vrcp.f32 %v492_v59  ;;  %v540_v53 = vadd.f32 %v536_v60, %v520_v55  ;;  %v490_v11 = vadd.f32 %v763_v48, %v761_v58  ;;  %v474_v12 = vmul.f32 1.442695, %v468_v61 }
 0x375   :  { %v767_v14 = vpop.eup %766  ;;  %v521_v16 = vmul.f32 %v765_v10, %v1016_v38  ;;  %v486_v17 = vmul.f32 1.442695, %v480_v51  ;;  %v470_v18 = vmul.f32 1.442695, %v466_v63  ;;  %v469_v24 = vsub.f32 %v730_v9, %v441_v7 }
 0x376   :  { %v769_v19 = vpop.eup %768  ;;  %774 = vrcp.f32 %v490_v11  ;;  %v493_v21 = vadd.f32 %v767_v14, %v765_v10  ;;  %v537_v23 = vmul.f32 %v767_v14, %v1022_v15  ;;  %v481_v26 = vsub.f32 %v734_v57, %v441_v7 }
 0x377   :  { %v771_v25 = vpop.eup %770  ;;  %776 = vpow2.f32 %v474_v12  ;;  %v467_v46 = vsub.f32 %v406_v40, %v439_v52  ;;  %v479_v47 = vsub.f32 %v422_v62, %v439_v52  ;;  %v482_v30 = vmul.f32 1.442695, %v478_v6 }
 0x378   :  { %778 = vrcp.f32 %v493_v21  ;;  %v541_v28 = vadd.f32 %v537_v23, %v521_v16  ;;  %v491_v29 = vadd.f32 %v771_v25, %v769_v19  ;;  %v476_v31 = vmul.f32 1.442695, %v469_v24 }
 0x379   :  { %780 = vpow2.f32 %v486_v17  ;;  %v488_v32 = vmul.f32 1.442695, %v481_v26  ;;  %v518_v33 = vmul.f32 %v761_v58, %v1006_v4  ;;  %v519_v34 = vmul.f32 %v769_v19, %v1014_v22 }
 0x37a   :  { %782 = vrcp.f32 %v491_v29  ;;  %v534_v35 = vmul.f32 %v763_v48, %v1008_v49  ;;  %v472_v36 = vmul.f32 1.442695, %v467_v46  ;;  %v535_v37 = vmul.f32 %v771_v25, %v1018_v41 }
 0x37b   :  { %784 = vpow2.f32 %v470_v18  ;;  %v484_v39 = vmul.f32 1.442695, %v479_v47 }
 0x37c   :  { %786 = vpow2.f32 %v482_v30  ;;  %v538_v9 = vadd.f32 %v534_v35, %v518_v33  ;;  %v539_v40 = vadd.f32 %v535_v37, %v519_v34 }
 0x37d   :  { %788 = vpow2.f32 %v476_v31 }
 0x37e   :  { %v773_v42 = vpop.eup %772  ;;  %790 = vpow2.f32 %v488_v32 }
 0x37f   :  { %v544_v43 = vmul.f32 %v773_v42, %v540_v53  ;;  %792 = vpow2.f32 %v472_v36 }
 0x380   :  { %v775_v44 = vpop.eup %774  ;;  %794 = vpow2.f32 %v484_v39 }
 0x381   :  { %v777_v45 = vpop.eup %776  ;;  %v542_v54 = vmul.f32 %v775_v44, %v538_v9 }
 0x382   :  { %v779_v55 = vpop.eup %778  ;;  %v548_v56 = vmul.f32 %v777_v45, %v1010_v50 }
 0x383   :  { %v781_v57 = vpop.eup %780  ;;  %v545_v58 = vmul.f32 %v779_v55, %v541_v28 }
 0x384   :  { %v783_v59 = vpop.eup %782  ;;  %v500_v60 = vadd.f32 %v781_v57, %v777_v45  ;;  %v552_v61 = vmul.f32 %v781_v57, %v1012_v5 }
 0x385   :  { %v785_v51 = vpop.eup %784  ;;  %v543_v62 = vmul.f32 %v783_v59, %v539_v40  ;;  %v563_v48 = vpack.c.bf16 %v545_v58, %v544_v43 }
 0x386   :  { %v787_v63 = vpop.eup %786  ;;  %796 = vrcp.f32 %v500_v60  ;;  %v546_v6 = vmul.f32 %v785_v51, %v1006_v4  ;;  %v556_v7 = vadd.f32 %v552_v61, %v548_v56 }
 0x387   :  { %v789_v52 = vpop.eup %788  ;;  %v498_v10 = vadd.f32 %v787_v63, %v785_v51  ;;  %v562_v53 = vpack.c.bf16 %v543_v62, %v542_v54  ;;  %v550_v11 = vmul.f32 %v787_v63, %v1008_v49 }
 0x388   :  { %v791_v50 = vpop.eup %790  ;;  %v549_v12 = vmul.f32 %v789_v52, %v1016_v38 }
 0x389   :  { %v793_v14 = vpop.eup %792  ;;  %798 = vrcp.f32 %v498_v10  ;;  %v501_v16 = vadd.f32 %v791_v50, %v789_v52  ;;  %737 = vmatprep.mubr.msk.bf16.mxu0 %vm33_vm0, %v562_v53  ;;  %v554_v5 = vadd.f32 %v550_v11, %v546_v6  ;;  %v553_v17 = vmul.f32 %v791_v50, %v1022_v15 }
 0x38a   :  { %v795_v18 = vpop.eup %794  ;;  %738 = vmatmul.mubr.msk.bf16.vlgmr.msra.gmra.mrb[8].mxu0 %vm33_vm0, %v563_v48  ;;  %v547_v4 = vmul.f32 %v793_v14, %v1014_v22  ;;  %v572_v22 = vpop.permute.xlu1 %571 }
 0x38b   :  { %800 = vrcp.f32 %v501_v16  ;;  %v499_v19 = vadd.f32 %v795_v18, %v793_v14  ;;  %v551_v49 = vmul.f32 %v795_v18, %v1018_v41  ;;  %v557_v21 = vadd.f32 %v553_v17, %v549_v12 }
 0x38d   :  { %802 = vrcp.f32 %v499_v19  ;;  %v555_v38 = vadd.f32 %v551_v49, %v547_v4 }
 0x390   :  { %v797_v23 = vpop.eup %796 }
 0x391   :  { %v560_v24 = vmul.f32 %v797_v23, %v556_v7 }
 0x393   :  { %v799_v25 = vpop.eup %798 }
 0x394   :  { %v558_v26 = vmul.f32 %v799_v25, %v554_v5 }
 0x395   :  { %v801_v46 = vpop.eup %800 }
 0x396   :  { %v561_v47 = vmul.f32 %v801_v46, %v557_v21 }
 0x397   :  { %v803_v28 = vpop.eup %802 }
 0x398   :  { %v559_v15 = vmul.f32 %v803_v28, %v555_v38  ;;  %v565_v29 = vpack.c.bf16 %v561_v47, %v560_v24 }
 0x39a   :  { %v564_v30 = vpack.c.bf16 %v559_v15, %v558_v26 }
 0x39c   :  { %741 = vmatprep.mubr.msk.bf16.mxu0 %vm33_vm0, %v564_v30 }
 0x39d   :  { %742 = vmatmul.mubr.msk.bf16.gmra.mrb[12].mxu0 %vm33_vm0, %v565_v29 }
 0x45d   :  { %v739_v31 = vpop.f32.mrb[8].mxu0 }
 0x45e   :  { %v629_v41 = vadd.f32 %v739_v31, %v572_v22  ;;  %v620_v32 = vpop.f32.mrb[9].mxu0 }
 0x45f   :  { %v621_v33 = vadd.f32 %v620_v32, %v572_v22  ;;  %v740_v34 = vpop.f32.mrb[10].mxu0 }
 0x460   :  { %v653_v35 = vadd.f32 %v629_v41, %v835_v2  ;;  %v632_v36 = vadd.f32 %v740_v34, %v572_v22  ;;  %v623_v37 = vpop.f32.mrb[11].mxu0 }
 0x461   :  { %v651_v39 = vadd.f32 %v621_v33, %v825_v0  ;;  %v624_v9 = vadd.f32 %v623_v37, %v572_v22 }
 0x462   :  { %661 = vst.msk [vmem:[%s1084_s2 + $0x10] sm:$0xff] %vm33_vm0, %v653_v35  ;;  %v654_v40 = vadd.f32 %v632_v36, %v840_v3 }
 0x463   :  { %659 = vst.msk [vmem:[%s1084_s2] sm:$0xff] %vm33_vm0, %v651_v39  ;;  %v652_v42 = vadd.f32 %v624_v9, %v830_v1 }
 0x464   :  { %662 = vst.msk [vmem:[%s1084_s2 + $0x18] sm:$0xff] %vm33_vm0, %v654_v40 }
 0x465   :  { %660 = vst.msk [vmem:[%s1084_s2 + $0x8] sm:$0xff] %vm33_vm0, %v652_v42 }
 0x470   :  { %v743_v0 = vpop.f32.mrb[12].mxu0 }
 0x471   :  { %v645_v2 = vadd.f32 %v743_v0, %v572_v22  ;;  %v636_v3 = vpop.f32.mrb[13].mxu0 }
 0x472   :  { %v637_v43 = vadd.f32 %v636_v3, %v572_v22  ;;  %v744_v44 = vpop.f32.mrb[14].mxu0 }
 0x473   :  { %v657_v45 = vadd.f32 %v645_v2, %v877_v20  ;;  %v648_v54 = vadd.f32 %v744_v44, %v572_v22  ;;  %v639_v55 = vpop.f32.mrb[15].mxu0 }
 0x474   :  { %v655_v1 = vadd.f32 %v637_v43, %v853_v8  ;;  %v640_v56 = vadd.f32 %v639_v55, %v572_v22 }
 0x475   :  { %665 = vst.msk [vmem:[%s1084_s2 + $0x30] sm:$0xff] %vm33_vm0, %v657_v45  ;;  %v658_v57 = vadd.f32 %v648_v54, %v888_v27 }
 0x476   :  { %663 = vst.msk [vmem:[%s1084_s2 + $0x20] sm:$0xff] %vm33_vm0, %v655_v1  ;;  %v656_v58 = vadd.f32 %v640_v56, %v864_v13 }
 0x477   :  { %666 = vst.msk [vmem:[%s1084_s2 + $0x38] sm:$0xff] %vm33_vm0, %v658_v57 }
 0x478   :  { %664 = vst.msk [vmem:[%s1084_s2 + $0x28] sm:$0xff] %vm33_vm0, %v656_v58 }

</bundles_post_ra>
